<compile_context>
chip_gen: v7x
topology: tpu7x:2x2x1
jax: 0.10.0
libtpu: 0.0.40
codegen_flags: <defaults>
</compile_context>

<pallas_src>
import functools

import numpy as np
import jax
import jax.numpy as jnp
from jax.experimental import pallas as pl
from jax.experimental.pallas import tpu as pltpu

EPS = 1e-5  # BatchNorm eps


# --------------------------------------------------------------------------
# Pallas kernels
# --------------------------------------------------------------------------
def _sigmoid(v):
    # explicit formulation (exp on EUP + divide); avoids relying on logistic lowering
    return 1.0 / (1.0 + jnp.exp(-v))


def _conv1x1_kernel(x_ref, w_ref, b_ref, o_ref, *, act):
    # x: (1, Cin, T) pixels on lanes | w: (Cout, Cin) | b: (Cout, 1)
    y = jnp.dot(w_ref[...], x_ref[0], preferred_element_type=jnp.float32)
    y = y + b_ref[...]                       # per-channel bias (BN folded in)
    if act == "silu":
        y = y * _sigmoid(y)
    o_ref[0] = y


def _conv3x3_kernel(x_ref, w_ref, b_ref, o_ref, *, Wp, L):
    # x: (1, Cin, Lp) zero-padded flattened plane | w: (9, Cout, Cin) | b: (Cout, 1)
    # Output pixel o (flat over H x Wp) = sum_t  W[t] @ x[:, o + dy*Wp + dx]
    x = x_ref[0]
    cout = o_ref.shape[1]
    acc = jnp.zeros((cout, L), jnp.float32)
    for t in range(9):                       # static unroll: 9 MXU matmuls
        dy, dx = divmod(t, 3)
        off = dy * Wp + dx
        acc = acc + jnp.dot(w_ref[t], x[:, off:off + L],
                            preferred_element_type=jnp.float32)
    y = acc + b_ref[...]
    o_ref[0] = y * _sigmoid(y)               # SiLU


def _decode_kernel(x_ref, g_ref, k_ref, o_ref):
    # x: (1, C, T) raw logits | g: (C, T) per-pixel additive term | k: (C, 2) poly coefs
    s = _sigmoid(x_ref[0])
    k = k_ref[...]
    c1 = k[:, 0:1]
    c2 = k[:, 1:2]
    # xy:  c1=2*stride, g=(coord-0.5)*stride   wh: c2=4*anchor*stride   conf: c1=1
    o_ref[0] = (c1 + c2 * s) * s + g_ref[...]


# --------------------------------------------------------------------------
# pallas_call wrappers
# --------------------------------------------------------------------------
def _pick_tile(L, max_tile=2048):
    # Prefer full-plane lane-dense tiles; for large maps use the biggest
    # multiple-of-128 tile (<= max_tile) that divides the pixel count.
    if L <= max_tile:
        return L
    for t in range(max_tile - max_tile % 128, 127, -128):
        if L % t == 0:
            return t
    return L


def conv1x1(x, w, b, act="none"):
    """Fused 1x1 conv (+folded BN) (+SiLU).  x: (N, Cin, H, W) -> (N, Cout, H, W)."""
    N, Cin, H, W = x.shape
    Cout = w.shape[0]
    L = H * W
    T = _pick_tile(L)
    out = pl.pallas_call(
        functools.partial(_conv1x1_kernel, act=act),
        out_shape=jax.ShapeDtypeStruct((N, Cout, L), jnp.float32),
        grid_spec=pltpu.PrefetchScalarGridSpec(
            num_scalar_prefetch=0,
            grid=(N, L // T),
            in_specs=[
                pl.BlockSpec((1, Cin, T), lambda n, t: (n, 0, t)),
                pl.BlockSpec((Cout, Cin), lambda n, t: (0, 0)),
                pl.BlockSpec((Cout, 1), lambda n, t: (0, 0)),
            ],
            out_specs=pl.BlockSpec((1, Cout, T), lambda n, t: (n, 0, t)),
        ),
        compiler_params=pltpu.CompilerParams(
            dimension_semantics=("parallel", "parallel")),
    )(x.reshape(N, Cin, L), w, b.reshape(Cout, 1))
    return out.reshape(N, Cout, H, W)


def conv3x3_bn_silu(x, w9, b):
    """Fused 3x3 conv (pad=1) + folded BN + SiLU.  x: (N, Cin, H, W) -> (N, Cout, H, W)."""
    N, Cin, H, W = x.shape
    Cout = w9.shape[1]
    Wp = W + 2
    # 1 row top / 2 rows bottom (extra zero row keeps the last shifted slice in
    # bounds), 1 column left/right; then flatten the plane.
    xp = jnp.pad(x, ((0, 0), (0, 0), (1, 2), (1, 1)))
    Lp = (H + 3) * Wp
    L = H * Wp
    out = pl.pallas_call(
        functools.partial(_conv3x3_kernel, Wp=Wp, L=L),
        out_shape=jax.ShapeDtypeStruct((N, Cout, L), jnp.float32),
        grid_spec=pltpu.PrefetchScalarGridSpec(
            num_scalar_prefetch=0,
            grid=(N,),
            in_specs=[
                pl.BlockSpec((1, Cin, Lp), lambda n: (n, 0, 0)),
                pl.BlockSpec((9, Cout, Cin), lambda n: (0, 0, 0)),
                pl.BlockSpec((Cout, 1), lambda n: (0, 0)),
            ],
            out_specs=pl.BlockSpec((1, Cout, L), lambda n: (n, 0, 0)),
        ),
        compiler_params=pltpu.CompilerParams(dimension_semantics=("parallel",)),
    )(xp.reshape(N, Cin, Lp), w9, b.reshape(Cout, 1))
    # drop the 2 junk columns introduced by the row-flattened shift trick
    return out.reshape(N, Cout, H, Wp)[:, :, :, :W]


def decode_layer(det, G, K):
    """Fused sigmoid + box decode on (N, C, ny, nx) detect logits."""
    N, C, ny, nx = det.shape
    L = ny * nx
    T = _pick_tile(L)
    out = pl.pallas_call(
        _decode_kernel,
        out_shape=jax.ShapeDtypeStruct((N, C, L), jnp.float32),
        grid_spec=pltpu.PrefetchScalarGridSpec(
            num_scalar_prefetch=0,
            grid=(N, L // T),
            in_specs=[
                pl.BlockSpec((1, C, T), lambda n, t: (n, 0, t)),
                pl.BlockSpec((C, T), lambda n, t: (0, t)),
                pl.BlockSpec((C, 2), lambda n, t: (0, 0)),
            ],
            out_specs=pl.BlockSpec((1, C, T), lambda n, t: (n, 0, t)),
        ),
        compiler_params=pltpu.CompilerParams(
            dimension_semantics=("parallel", "parallel")),
    )(det.reshape(N, C, L), G, K)
    return out.reshape(N, C, ny, nx)


# --------------------------------------------------------------------------
# Parameter folding (host side, one-time)
# --------------------------------------------------------------------------
def fold_convbn(p):
    scale = p["g"] / jnp.sqrt(p["v"] + EPS)
    return p["w"] * scale[:, None, None, None], p["b"] - p["m"] * scale


def to_mat(w):      # (Cout, Cin, 1, 1) -> (Cout, Cin)
    return w.reshape(w.shape[0], w.shape[1])


def to_taps(w):     # (Cout, Cin, 3, 3) -> (9, Cout, Cin), tap t = dy*3 + dx
    return jnp.transpose(w, (2, 3, 0, 1)).reshape(9, w.shape[0], w.shape[1])


def prepare_layer_params(rp, na, nc):
    no = nc + 5
    p = {}
    w, bb = fold_convbn(rp["a"]);  p["a_w"], p["a_b"] = to_mat(w), bb
    w, bb = fold_convbn(rp["b1"]); p["b1_w9"], p["b1_b"] = to_taps(w), bb
    w, bb = fold_convbn(rp["b2"]); p["b2_w9"], p["b2_b"] = to_taps(w), bb
    w, bb = fold_convbn(rp["c1"]); p["c1_w"], p["c1_b"] = to_mat(w), bb
    w, bb = fold_convbn(rp["c2"]); p["c2_w"], p["c2_b"] = to_mat(w), bb
    # reg_preds + obj_preds fused into one 1x1 conv
    p["ro_w"] = jnp.concatenate([to_mat(rp["reg"]["w"]), to_mat(rp["obj"]["w"])], axis=0)
    p["ro_b"] = jnp.concatenate([rp["reg"]["b"], rp["obj"]["b"]], axis=0)
    p["c3_w"], p["c3_b"] = to_mat(rp["c3"]["w"]), rp["c3"]["b"]
    # channel interleave matching torch.cat((reg.view, obj.view, cls.view), 2).view(...)
    perm = []
    for a in range(na):
        perm += [a * 4 + k for k in range(4)]             # 4 box channels
        perm += [4 * na + a]                              # objectness
        perm += [5 * na + a * nc + j for j in range(nc)]  # class scores
    p["perm"] = jnp.asarray(perm, dtype=jnp.int32)
    return p


def make_decode_consts(ny, nx, anchors_i, stride, na, nc):
    """Per-channel polynomial constants: decoded = (c1 + c2*sig)*sig + g."""
    no = nc + 5
    C = na * no
    L = ny * nx
    yv, xv = np.meshgrid(np.arange(ny, dtype=np.float32),
                         np.arange(nx, dtype=np.float32), indexing="ij")
    gx = (xv - 0.5).reshape(-1) * stride
    gy = (yv - 0.5).reshape(-1) * stride
    G = np.zeros((C, L), np.float32)
    K = np.zeros((C, 2), np.float32)
    K[:, 0] = 1.0                                   # default: conf/cls pass-through
    ag = np.asarray(anchors_i, np.float32) * stride
    for a in range(na):
        b = a * no
        G[b + 0] = gx
        G[b + 1] = gy
        K[b + 0] = (2.0 * stride, 0.0)
        K[b + 1] = (2.0 * stride, 0.0)
        K[b + 2] = (0.0, 4.0 * ag[a, 0])
        K[b + 3] = (0.0, 4.0 * ag[a, 1])
    return jnp.asarray(G), jnp.asarray(K)


# --------------------------------------------------------------------------
# Module forward (Pallas path, inference / eval semantics, inplace=False)
# --------------------------------------------------------------------------
def decouple1_forward(x, p):
    xa = conv1x1(x, p["a_w"], p["a_b"], act="silu")       # self.a
    x1 = conv3x3_bn_silu(xa, p["b1_w9"], p["b1_b"])       # self.b1
    x1 = conv3x3_bn_silu(x1, p["b2_w9"], p["b2_b"])       # self.b2
    ro = conv1x1(x1, p["ro_w"], p["ro_b"], act="none")    # reg_preds | obj_preds (fused)
    xc = conv1x1(xa, p["c1_w"], p["c1_b"], act="silu")    # self.c1
    xc = conv1x1(xc, p["c2_w"], p["c2_b"], act="silu")    # self.c2
    cls = conv1x1(xc, p["c3_w"], p["c3_b"], act="none")   # self.c3
    stacked = jnp.concatenate([ro, cls], axis=1)          # [reg(4na) | obj(na) | cls(na*nc)]
    return jnp.take(stacked, p["perm"], axis=1)           # -> (N, na*(nc+5), ny, nx)


def decoupled_detect_forward(xs, layer_params, anchors, strides, na, nc):
    no = nc + 5
    z, raw = [], []
    for i, x in enumerate(xs):
        N, _, ny, nx = x.shape
        det = decouple1_forward(x, layer_params[i])
        raw.append(det.reshape(N, na, no, ny, nx).transpose(0, 1, 3, 4, 2))
        G, K = make_decode_consts(ny, nx, anchors[i], strides[i], na, nc)
        dec = decode_layer(det, G, K)
        z.append(dec.reshape(N, na, no, ny, nx).transpose(0, 1, 3, 4, 2)
                    .reshape(N, na * ny * nx, no))
    return jnp.concatenate(z, axis=1), raw


# --------------------------------------------------------------------------
# Pure-JAX reference (independent of the kernels)
# --------------------------------------------------------------------------
def _conv_ref(x, w, b=None, pad=0):
    y = jax.lax.conv_general_dilated(
        x, w, window_strides=(1, 1), padding=((pad, pad), (pad, pad)),
        dimension_numbers=("NCHW", "OIHW", "NCHW"),
        precision=jax.lax.Precision.HIGHEST)
    if b is not None:
        y = y + b.reshape(1, -1, 1, 1)
    return y


def _convbn_silu_ref(x, p, pad):
    y = _conv_ref(x, p["w"], None, pad)
    y = (y - p["m"].reshape(1, -1, 1, 1)) / jnp.sqrt(p["v"].reshape(1, -1, 1, 1) + EPS)
    y = y * p["g"].reshape(1, -1, 1, 1) + p["b"].reshape(1, -1, 1, 1)
    return y * jax.nn.sigmoid(y)


def decouple1_ref(x, rp, na, nc):
    N, _, ny, nx = x.shape
    xa = _convbn_silu_ref(x, rp["a"], 0)
    x1 = _convbn_silu_ref(_convbn_silu_ref(xa, rp["b1"], 1), rp["b2"], 1)
    b_reg = _conv_ref(x1, rp["reg"]["w"], rp["reg"]["b"], 0)
    b_obj = _conv_ref(x1, rp["obj"]["w"], rp["obj"]["b"], 0)
    c = _conv_ref(_convbn_silu_ref(_convbn_silu_ref(xa, rp["c1"], 0), rp["c2"], 0),
                  rp["c3"]["w"], rp["c3"]["b"], 0)
    out = jnp.concatenate(
        [b_reg.reshape(N, na, 4, ny, nx),
         b_obj.reshape(N, na, 1, ny, nx),
         c.reshape(N, na, nc, ny, nx)], axis=2)
    return out.reshape(N, na * (nc + 5), ny, nx)


def detect_ref(xs, raw_params, anchors, strides, na, nc):
    no = nc + 5
    z, outs = [], []
    for i, x in enumerate(xs):
        N, _, ny, nx = x.shape
        det = decouple1_ref(x, raw_params[i], na, nc)
        xi = det.reshape(N, na, no, ny, nx).transpose(0, 1, 3, 4, 2)
        outs.append(xi)
        yv, xv = jnp.meshgrid(jnp.arange(ny, dtype=jnp.float32),
                              jnp.arange(nx, dtype=jnp.float32), indexing="ij")
        grid = (jnp.stack((xv, yv), axis=-1) - 0.5).reshape(1, 1, ny, nx, 2)
        anchor_grid = (jnp.asarray(anchors[i]) * strides[i]).reshape(1, na, 1, 1, 2)
        y = jax.nn.sigmoid(xi)
        xy = (y[..., 0:2] * 2.0 + grid) * strides[i]
        wh = (y[..., 2:4] * 2.0) ** 2 * anchor_grid
        y = jnp.concatenate((xy, wh, y[..., 4:]), axis=-1)
        z.append(y.reshape(N, -1, no))
    return jnp.concatenate(z, axis=1), outs


# --------------------------------------------------------------------------
# Parameter init (synthetic, deterministic; shapes match the PyTorch module)
# --------------------------------------------------------------------------
def init_convbn(key, cout, cin, k):
    ks = jax.random.split(key, 5)
    return dict(
        w=jax.random.normal(ks[0], (cout, cin, k, k), jnp.float32) / np.sqrt(cin * k * k),
        g=1.0 + 0.1 * jax.random.normal(ks[1], (cout,), jnp.float32),
        b=0.1 * jax.random.normal(ks[2], (cout,), jnp.float32),
        m=0.1 * jax.random.normal(ks[3], (cout,), jnp.float32),
        v=jnp.abs(jax.random.normal(ks[4], (cout,), jnp.float32)) + 0.5,
    )


def init_conv(key, cout, cin):
    ks = jax.random.split(key, 2)
    return dict(
        w=jax.random.normal(ks[0], (cout, cin, 1, 1), jnp.float32) / np.sqrt(cin),
        b=0.1 * jax.random.normal(ks[1], (cout,), jnp.float32),
    )


if __name__ == "__main__":
    key = jax.random.PRNGKey(0)
    nc, na = 4, 3
    anchors_spec = ((10, 13, 16, 30, 33, 23), (30, 61, 62, 45, 59, 119))
    nl = len(anchors_spec)
    anchors = np.asarray(anchors_spec, np.float32).reshape(nl, na, 2)
    ch = (16, 32)                      # input channels per detection level
    spatial = ((16, 16), (8, 8))       # feature-map sizes
    strides = (8.0, 16.0)
    N = 2

    keys = jax.random.split(key, 2 * nl)
    xs = [jax.random.normal(keys[i], (N, ch[i], spatial[i][0], spatial[i][1]),
                            jnp.float32) for i in range(nl)]

    raw_params = []
    for i in range(nl):
        cin = ch[i]
        c_ = min(cin, 256)
        cs = [int(v + na * 5)
              for v in (c_ - na * 5) * np.linspace(1.0, 0.0, 4, dtype=np.float32)]
        kk = jax.random.split(keys[nl + i], 8)
        raw_params.append(dict(
            a=init_convbn(kk[0], c_, cin, 1),
            b1=init_convbn(kk[1], cs[1], c_, 3),
            b2=init_convbn(kk[2], cs[2], cs[1], 3),
            reg=init_conv(kk[3], 4 * na, cs[2]),
            obj=init_conv(kk[4], 1 * na, cs[2]),
            c1=init_convbn(kk[5], c_, c_, 1),
            c2=init_convbn(kk[6], c_, c_, 1),
            c3=init_conv(kk[7], na * nc, c_),
        ))

    layer_params = [prepare_layer_params(rp, na, nc) for rp in raw_params]

    z, raw = decoupled_detect_forward(xs, layer_params, anchors, strides, na, nc)
    z = jax.block_until_ready(z)

    z_ref, raw_ref = detect_ref(xs, raw_params, anchors, strides, na, nc)

    no = nc + 5
    total = sum(na * h * w for (h, w) in spatial)
    assert z.shape == (N, total, no), z.shape
    # Tolerance covers possible MXU matmul precision-mode differences vs the
    # HIGHEST-precision XLA reference; observed error is far below this.
    assert jnp.allclose(z, z_ref, atol=5e-2, rtol=5e-2), \
        float(jnp.max(jnp.abs(z - z_ref)))
    for a, b in zip(raw, raw_ref):
        assert a.shape == b.shape, (a.shape, b.shape)
        assert jnp.allclose(a, b, atol=5e-2, rtol=5e-2), \
            float(jnp.max(jnp.abs(a - b)))
    print("KERNEL_OK")
</pallas_src>

<mosaic_0001>
module attributes {stable_mosaic.version = 11 : i64} {
  func.func @_conv1x1_kernel(%arg0: i32, %arg1: i32, %arg2: memref<1x16x256xf32, #tpu.memory_space<vmem>>, %arg3: memref<16x16xf32, #tpu.memory_space<vmem>>, %arg4: memref<16x1xf32, #tpu.memory_space<vmem>>, %arg5: memref<1x16x256xf32, #tpu.memory_space<vmem>>) attributes {dimension_semantics = [#tpu.dimension_semantics<parallel>, #tpu.dimension_semantics<parallel>], iteration_bounds = array<i64: 2, 1>, scalar_prefetch = 0 : i64, scratch_operands = 0 : i64, tpu.core_type = #tpu.core_type<tc>, window_params = [{transform_indices = @transform_0, window_bounds = array<i64: 1, 16, 256>}, {pipeline_mode = #tpu.pipeline_mode<synchronous>, transform_indices = @transform_1, window_bounds = array<i64: 16, 16>}, {pipeline_mode = #tpu.pipeline_mode<synchronous>, transform_indices = @transform_2, window_bounds = array<i64: 16, 1>}, {transform_indices = @transform_3, window_bounds = array<i64: 1, 16, 256>}]} {
    %c0 = arith.constant 0 : index
    %c0_0 = arith.constant 0 : index
    %0 = vector.load %arg3[%c0, %c0_0] : memref<16x16xf32, #tpu.memory_space<vmem>>, vector<16x16xf32>
    %c0_1 = arith.constant 0 : index
    %c0_2 = arith.constant 0 : index
    %c0_3 = arith.constant 0 : index
    %1 = vector.load %arg2[%c0_1, %c0_2, %c0_3] : memref<1x16x256xf32, #tpu.memory_space<vmem>>, vector<1x16x256xf32>
    %2 = vector.shape_cast %1 : vector<1x16x256xf32> to vector<16x256xf32>
    %cst = arith.constant dense<0.000000e+00> : vector<16x256xf32>
    %3 = tpu.matmul %0, %2, %cst {dimension_numbers = #tpu.dot_dimension_numbers<[1], [0], [0], [1], [0, 0, 1, 1], [], []>} : vector<16x16xf32>, vector<16x256xf32>, vector<16x256xf32> -> vector<16x256xf32>
    %c0_4 = arith.constant 0 : index
    %c0_5 = arith.constant 0 : index
    %4 = vector.load %arg4[%c0_4, %c0_5] : memref<16x1xf32, #tpu.memory_space<vmem>>, vector<16x1xf32>
    %5 = vector.broadcast %4 : vector<16x1xf32> to vector<16x256xf32>
    %6 = arith.addf %3, %5 : vector<16x256xf32>
    %cst_6 = arith.constant 0.000000e+00 : f32
    %7 = vector.broadcast %cst_6 : f32 to vector<16x256xf32>
    %8 = arith.subf %7, %6 : vector<16x256xf32>
    %9 = math.exp %8 : vector<16x256xf32>
    %cst_7 = arith.constant 1.000000e+00 : f32
    %10 = vector.broadcast %cst_7 : f32 to vector<16x256xf32>
    %11 = arith.addf %10, %9 : vector<16x256xf32>
    %cst_8 = arith.constant 1.000000e+00 : f32
    %12 = vector.broadcast %cst_8 : f32 to vector<16x256xf32>
    %13 = arith.divf %12, %11 : vector<16x256xf32>
    %14 = arith.mulf %6, %13 : vector<16x256xf32>
    %c0_9 = arith.constant 0 : index
    %c0_10 = arith.constant 0 : index
    %c0_11 = arith.constant 0 : index
    %15 = vector.load %arg5[%c0_9, %c0_10, %c0_11] : memref<1x16x256xf32, #tpu.memory_space<vmem>>, vector<1x16x256xf32>
    %16 = vector.shape_cast %15 : vector<1x16x256xf32> to vector<16x256xf32>
    %17 = vector.shape_cast %14 : vector<16x256xf32> to vector<1x16x256xf32>
    tpu.vector_store %arg5[%c0_9, %c0_10, %c0_11], %17 {strides = array<i32>} : memref<1x16x256xf32, #tpu.memory_space<vmem>>, vector<1x16x256xf32>,
    return
  }
  func.func @transform_0(%arg0: i32, %arg1: i32) -> (i32, i32, i32) {
    %c0_i32 = arith.constant 0 : i32
    %c0_i32_0 = arith.constant 0 : i32
    return %arg0, %c0_i32, %arg1 : i32, i32, i32
  }
  func.func @transform_1(%arg0: i32, %arg1: i32) -> (i32, i32) {
    %c0_i32 = arith.constant 0 : i32
    %c0_i32_0 = arith.constant 0 : i32
    %c0_i32_1 = arith.constant 0 : i32
    return %c0_i32, %c0_i32_0 : i32, i32
  }
  func.func @transform_2(%arg0: i32, %arg1: i32) -> (i32, i32) {
    %c0_i32 = arith.constant 0 : i32
    %c0_i32_0 = arith.constant 0 : i32
    %c0_i32_1 = arith.constant 0 : i32
    return %c0_i32, %c0_i32_0 : i32, i32
  }
  func.func @transform_3(%arg0: i32, %arg1: i32) -> (i32, i32, i32) {
    %c0_i32 = arith.constant 0 : i32
    %c0_i32_0 = arith.constant 0 : i32
    return %arg0, %c0_i32, %arg1 : i32, i32, i32
  }
}

</mosaic_0001>

<bundles_post_ra>
// kernel: tpu_custom_call.1
= control target key start
LH: loop header
LB: loop body
LE: loop exit
PB: predicated region body
PF: predicated region fallthrough
CT: control target
= control target key end

     0   :  { %8 = vsyncpa [#allocation3], 0  ;;  %s889_s0 = inlined_call_operand.hbm [shape: f32[2,16,256], index: 0, kind: input, shape index: {}]   ;;  %s890_s1 = inlined_call_operand.vmem [shape: f32[16,16], index: 1, kind: input, shape index: {}]   ;;  %s891_s2 = inlined_call_operand.vmem [shape: f32[16,1], index: 2, kind: input, shape index: {}]   ;;  %s892_s3 = inlined_call_operand.hbm [shape: f32[2,16,256], index: 3, kind: output, shape index: {}]  }
   0x1   :  { %10 = vsyncpa [#allocation3 + $0x1], 0 }
   0x2   :  { %11 = vsyncpa [#allocation4], 0 }
   0x3   :  { %13 = vsyncpa [#allocation4 + $0x1], 0  ;;  %s698_s12 = smov 0   ;;  %s700_s13 = smov 0  }
   0x4   :  { %s702_s14 = smov 0   ;;  %s704_s15 = smov 0  }
   0x5   :  { %s706_s16 = smov 0   ;;  %s708_s17 = smov 0  }
   0x6 LB: > { %s446_s18 = sadd.s32 4294967295, %s668_s17   ;;  %s447_s19 = sadd.s32 4294967294, %s668_s17   ;;  %s668_s17 = sphi %s708_s17, %s19_s17   ;;  %s664_s16 = sphi %s706_s16, %s907_s16   ;;  %s660_s15 = sphi %s704_s15, %s906_s15   ;;  %s656_s14 = sphi %s702_s14, %s905_s14   ;;  %s652_s13 = sphi %s700_s13, %s904_s13   ;;  %s648_s12 = sphi %s698_s12, %s903_s12  }
   0x7   : > { %s31_s20 = sadd.s32 1, %s664_s16  ;;  %s40_s21 = sadd.s32 1, %s656_s14 }
   0x8   : > { %p33_p0 = scmp.ge.s32.totalorder %s31_s20, 2  ;;  %p47_p1 = scmp.ne.s32.totalorder %s656_s14, %s652_s13 }
   0x9   : > { %p48_p2 = scmp.eq.s32.totalorder %s668_s17, 0  ;;  %p53_p3 = scmp.ne.s32.totalorder %s652_s13, %s648_s12 }
   0xa   : > { %s909_s20 = smov (%p33_p0, %s31_s20), 0  ;;  %p54_p5 = scmp.eq.s32.totalorder %s446_s18, 0 }
   0xb   : > { %p739_p4 = por %p48_p2, %p47_p1  ;;  %s35_s23 = ssub.s32 %s664_s16, %s909_s20 }
   0xc   : > { %p121_p6 = scmp.eq.s32.totalorder %s446_s18, 1  ;;  %p38_p7 = scmp.eq.s32.totalorder %s35_s23, 0 }
   0xd   : > { %p745_p8 = por %p54_p5, %p53_p3  ;;  %p127_p10 = scmp.eq.s32.totalorder %s447_s19, 1 }
   0xe   : > { %p749_p9 = por %p121_p6, %p47_p1  ;;  %p483_p13 = scmp.lt.s32.totalorder %s668_s17, 2 }
   0xf   : > { %s754_s26 = scalar_select %p38_p7, %s656_s14, %s40_s21  }
  0x10   : > { %s896_s25 = scalar_select %p749_p9, 1, 0 }
  0x11   : > { %p756_p11 = por %p127_p10, %p53_p3  ;;  %s153_s28 = sand.u32 1, %s656_s14  }
  0x12   : > { %s450_s29 = sshll.u32 %s153_s28, 5  ;;  %s463_s30 = sshll.u32 %s664_s16, 9 }
  0x13   : > { %s897_s27 = scalar_select %p756_p11, 1, 0 }
  0x14   : > { %s767_s6 = scalar_lea.hbm %s889_s0, %s463_s30  ;;  %s157_s7 = scalar_lea.vmem [#allocation2], %s450_s29 }
  0x15   : > { %s166_s8 = sshll.u32 %s157_s7, 4  ;;  %p773_p0 = pnand %p483_p13, %p739_p4  ;;  %s769_s8 = int_to_ptr.vmem [resolvable:$true] %s166_s8 }
  0x16   : > { %s778_s10 = scalar_lea.sflag [#allocation3], %s153_s28  ;;  %s556_s11 = scalar_lea.hbm %s767_s6, 512 }
  0x17   : > { %p557_p2 = scmp.ne.s32.totalorder %s767_s6, %s556_s11  ;;  %p558_p3 = pneg %p773_p0 }
  0x18   : > { %s561_s21 = scalar_lea.hbm %s889_s0, 1024  ;;  %p562_p4 = scmp.lt.u32.totalorder %s767_s6, %s889_s0 }
  0x19   : > { %p559_p5 = pnand %p558_p3, %p557_p2  ;;  %p563_p7 = scmp.lt.u32.totalorder %s561_s21, %s556_s11 }
  0x1a   : > { %p565_p13 = scmp.lt.u32.totalorder %s556_s11, %s767_s6 }
  0x1b   : > { %p560_p6 = pneg %p559_p5  ;;  %p564_p10 = por %p563_p7, %p562_p4 }
  0x1d   : > { %p566_p12 = por %p565_p13, %p564_p10 }
  0x1f   : > { %p567_p1 = pnand %p566_p12, %p560_p6 }
  0x21   : > { %570 = shalt.err (!%p567_p1)
}
  0x22   : > { %s571_s28 = scalar_lea.vmem %s769_s8, 512  ;;  %s670_s29 = smov [#allocation2]  }
  0x23   : > { %p572_p2 = scmp.ne.s32.totalorder %s769_s8, %s571_s28  ;;  %s576_s30 = sshll.u32 %s670_s29, 4  ;;  %s577_s30 = int_to_ptr.vmem [resolvable:$false] %s576_s30 }
  0x24   : > { %s578_s4 = scalar_lea.vmem %s577_s30, 1024  ;;  %p579_p9 = scmp.lt.s32.totalorder %s769_s8, %s577_s30 }
  0x25   : > { %p574_p5 = pnand %p572_p2, %p558_p3  ;;  %p580_p4 = scmp.lt.s32.totalorder %s578_s4, %s571_s28 }
  0x27   : > { %p575_p11 = pneg %p574_p5  ;;  %p581_p7 = por %p580_p4, %p579_p9 }
  0x29   : > { %p582_p10 = pnand %p581_p7, %p575_p11 }
  0x2b   : > { %585 = shalt.err (!%p582_p10)
}
  0x2c   : > { %s671_s5 = smov 256   ;;  %s672_s7 = smov 16  }
  0x2d   : > { %478 = dma.hbm_to_vmem [thread:$0]  (!%p773_p0), %s767_s6, 512, %s769_s8, %s778_s10, %s671_s5, %s671_s5, %s672_s7  }
  0x2e   : > { %p174_p12 = scmp.lt.s32.totalorder %s668_s17, 3  ;;  %p899_p1 = scmp.ge.s32.totalorder %s668_s17, 1 }
  0x30   : > { %p175_p3 = pnand %p899_p1, %p174_p12 }
  0x31   : > { %s810_s11 = sand.u32 (!%p175_p3), 1, %s652_s13  }
  0x32   : > { %178 = sbr.rel (%p175_p3) target bundleno = 327 (0x147), region = 32  ;;  %s454_s18 = sshll.u32 (!%p175_p3), %s810_s11, 5 }
  0x33   : > { %s181_s19 = scalar_lea.sflag (!%p175_p3), [#allocation3], %s810_s11  ;;  %s184_s21 = scalar_lea.vmem (!%p175_p3), [#allocation2], %s454_s18 }
  0x39   : > { %639 = dma.done.wait (%p745_p8), %s181_s19, 512  }
  0x3a   : > { %641 = vsyncadd (%p745_p8), %s181_s19, 4294966784  ;;  %v673_v0 = vmov 0.0   ;;  %v674_v1 = vmov 0   ;;  %v212_v2 = vld [vmem:[%s184_s21 + $0x8] sm:$0xff]  ;;  %v214_v3 = vld [vmem:[%s184_s21 + $0x18] sm:$0xff]  ;;  %vm227_vm0 = vcmask 130048  }
  0x3b   : > { %298 = vmatprep.mubr.f32.mxu0 %v673_v0  ;;  %304 = vmatprep.mubr.f32.mxu1 %v673_v0  ;;  %v211_v4 = vld [vmem:[%s184_s21] sm:$0xff]  ;;  %v465_v5 = vpack.c.bf16 %v214_v3, %v212_v2  ;;  %v213_v6 = vld [vmem:[%s184_s21 + $0x10] sm:$0xff]  ;;  %v210_v10 = vld [vmem:[%s890_s1 + $0x8] sm:$0xff]  ;;  %s206_s29 = scalar_lea.vmem [#allocation5], %s454_s18  ;;  %s464_s4 = sshll.u32 %s660_s15, 9 }
  0x3c   : > { %539 = vset.pattern.permute.xlu0 %v674_v1  ;;  %v467_v7 = vpack.c.bf16 %v213_v6, %v211_v4  ;;  %v215_v8 = vld [vmem:[%s891_s2] sm:$0xff]  ;;  %v216_v11 = vld [vmem:[%s891_s2 + $0x8] sm:$0xff]  ;;  %s359_s30 = sshll.u32 %s206_s29, 4  ;;  %s840_s18 = scalar_lea.hbm %s892_s3, %s464_s4  ;;  %s835_s30 = int_to_ptr.vmem [resolvable:$true] %s359_s30 }
  0x3d   : > { %466 = vmatprep.subr.bf16.mxu0 %v465_v5  ;;  %469 = vmatprep.subr.bf16.mxu1 %v465_v5  ;;  %v209_v9 = vld [vmem:[%s890_s1] sm:$0xff]  ;;  %s344_s15 = scalar_lea.sflag [#allocation4], %s810_s11  ;;  %s586_s19 = scalar_lea.vmem %s835_s30, 512 }
  0x3e   : > { %468 = vmatpush1.bf16.msra.mxu0 %v467_v7  ;;  %470 = vmatpush1.bf16.msra.mxu1 %v467_v7  ;;  %p587_p8 = scmp.ne.s32.totalorder %s835_s30, %s586_s19  ;;  %p900_p9 = scmp.ne.s32.totalorder %s896_s25, 0 }
  0x3f   : > { %219 = vperm.xlu0 %539, %v215_v8   ;;  %s675_s21 = smov [#allocation5]  }
  0x40   : > { %p588_p11 = pnand %p587_p8, %p900_p9  ;;  %s590_s6 = sshll.u32 %s675_s21, 4  ;;  %s591_s6 = int_to_ptr.vmem [resolvable:$false] %s590_s6 }
  0x41   : > { %456 = vmatmul.mubr.msk.f32.vlgmr.msra.gmra.mrb[0].mxu0 %vm227_vm0, %v209_v9  ;;  %457 = vmatmul.mubr.msk.f32.vlgmr.msra.gmra.mrb[0].mxu1 %vm227_vm0, %v210_v10  ;;  %s592_s8 = scalar_lea.vmem %s591_s6, 1024  ;;  %p593_p6 = scmp.lt.s32.totalorder %s835_s30, %s591_s6 }
  0x42   : > { %p589_p0 = pneg %p588_p11  ;;  %p594_p13 = scmp.lt.s32.totalorder %s592_s8, %s586_s19 }
  0x43   : > { %224 = vperm.xlu0 %539, %v216_v11  }
  0x44   : > { %p595_p2 = por %p594_p13, %p593_p6 }
  0x46   : > { %p596_p5 = pnand %p595_p2, %p589_p0 }
  0xbe   : > { %v220_v12 = vpop.permute.xlu0 %219 }
  0xc2   : > { %v225_v13 = vpop.permute.xlu0 %224 }
 0x114   : > { %v300_v14 = vpop.f32.mrb[0].mxu0  ;;  %v306_v15 = vpop.f32.mrb[0].mxu1 }
 0x115   : > { %v301_v16 = vadd.f32 %v300_v14, %v220_v12  ;;  %v307_v17 = vadd.f32 %v306_v15, %v225_v13  ;;  %v302_v18 = vpop.f32.mrb[1].mxu0  ;;  %v308_v19 = vpop.f32.mrb[1].mxu1 }
 0x116   : > { %v303_v20 = vadd.f32 %v302_v18, %v220_v12  ;;  %v309_v21 = vadd.f32 %v308_v19, %v225_v13 }
 0x117   : > { %v311_v22 = vsub.f32 0.0, %v301_v16  ;;  %v313_v23 = vsub.f32 0.0, %v307_v17 }
 0x118   : > { %v312_v24 = vsub.f32 0.0, %v303_v20  ;;  %v314_v25 = vsub.f32 0.0, %v309_v21 }
 0x119   : > { %v315_v26 = vmul.f32 1.442695, %v311_v22  ;;  %v319_v27 = vmul.f32 1.442695, %v313_v23 }
 0x11a   : > { %v317_v28 = vmul.f32 1.442695, %v312_v24  ;;  %v321_v29 = vmul.f32 1.442695, %v314_v25 }
 0x11b   : > { %540 = vpow2.f32 %v315_v26 }
 0x11c   : > { %542 = vpow2.f32 %v319_v27 }
 0x11d   : > { %544 = vpow2.f32 %v317_v28 }
 0x11e   : > { %546 = vpow2.f32 %v321_v29 }
 0x125   : > { %v541_v30 = vpop.eup %540 }
 0x126   : > { %v543_v31 = vpop.eup %542  ;;  %v323_v32 = vadd.f32 1.0, %v541_v30 }
 0x127   : > { %v545_v33 = vpop.eup %544  ;;  %v325_v34 = vadd.f32 1.0, %v543_v31 }
 0x128   : > { %v547_v35 = vpop.eup %546  ;;  %548 = vrcp.f32 %v323_v32  ;;  %v324_v36 = vadd.f32 1.0, %v545_v33 }
 0x129   : > { %550 = vrcp.f32 %v325_v34  ;;  %v326_v37 = vadd.f32 1.0, %v547_v35 }
 0x12a   : > { %552 = vrcp.f32 %v324_v36 }
 0x12b   : > { %554 = vrcp.f32 %v326_v37 }
 0x132   : > { %v549_v38 = vpop.eup %548 }
 0x133   : > { %v551_v39 = vpop.eup %550  ;;  %v335_v40 = vmul.f32 %v549_v38, %v301_v16 }
 0x134   : > { %v553_v41 = vpop.eup %552  ;;  %v337_v42 = vmul.f32 %v551_v39, %v307_v17 }
 0x135   : > { %v555_v43 = vpop.eup %554  ;;  %339 = vst [vmem:[%s206_s29] sm:$0xff] %v335_v40  ;;  %v336_v44 = vmul.f32 %v553_v41, %v303_v20 }
 0x136   : > { %341 = vst [vmem:[%s206_s29 + $0x10] sm:$0xff] %v337_v42  ;;  %v338_v45 = vmul.f32 %v555_v43, %v309_v21 }
 0x137   : > { %340 = vst [vmem:[%s206_s29 + $0x8] sm:$0xff] %v336_v44 }
 0x138   : > { %342 = vst [vmem:[%s206_s29 + $0x18] sm:$0xff] %v338_v45 }
 0x139   : > { %599 = shalt.err (!%p596_p5)
}
 0x13a   : > { %s600_s24 = scalar_lea.hbm %s840_s18, 512  ;;  %s604_s22 = scalar_lea.hbm %s892_s3, 1024 }
 0x13b   : > { %p601_p4 = scmp.ne.s32.totalorder %s840_s18, %s600_s24  ;;  %p605_p12 = scmp.lt.u32.totalorder %s840_s18, %s892_s3 }
 0x13c   : > { %p606_p1 = scmp.lt.u32.totalorder %s604_s22, %s600_s24  ;;  %p608_p8 = scmp.lt.u32.totalorder %s600_s24, %s840_s18 }
 0x13d   : > { %p602_p7 = pnand %p601_p4, %p900_p9 }
 0x13e   : > { %p607_p3 = por %p606_p1, %p605_p12 }
 0x13f   : > { %p603_p10 = pneg %p602_p7 }
 0x140   : > { %p609_p11 = por %p608_p8, %p607_p3 }
 0x142   : > { %p610_p0 = pnand %p609_p11, %p603_p10 }
 0x144   : > { %613 = shalt.err (!%p610_p0)
}
 0x145   : > { %s676_s29 = smov 256   ;;  %s677_s4 = smov 16  }
 0x146   : > { %473 = dma.vmem_to_hbm [thread:$0]  (%p900_p9), %s835_s30, 512, %s840_s18, %s344_s15, %s676_s29, %s676_s29, %s677_s4  }
 0x147 PF: > { %s374_s5 = sand.u32 1, %s648_s12   ;;  %p901_p6 = scmp.ne.s32.totalorder %s897_s27, 0 }
 0x148   : > { %p902_p13 = scmp.ge.s32.totalorder %s668_s17, 2  ;;  %s375_s7 = scalar_lea.sflag [#allocation4], %s374_s5 }
 0x14a   : > { %p480_p2 = pnand %p902_p13, %p901_p6 }
 0x14c   : > { %643 = dma.done.wait (!%p480_p2), %s375_s7, 512  }
 0x14d   : > { %645 = vsyncadd (!%p480_p2), %s375_s7, 4294966784  ;;  %s19_s17 = sadd.s32 1, %s668_s17   ;;  %s903_s12 = smov %s652_s13 }
 0x14e   : > { %p16_p5 = scmp.ge.s32.totalorder %s19_s17, 4   ;;  %s904_s13 = smov %s656_s14 }
 0x14f   : > { %s905_s14 = smov %s754_s26  ;;  %s906_s15 = smov %s664_s16 }
 0x150   : > { %s907_s16 = smov %s909_s20  ;;  %18 = sbr.rel (!%p16_p5) target bundleno = 6 (0x6), region = 77 }
 0x157   :  { %380 = vsyncpa [#allocation3], 1 }
 0x158   :  { %382 = vsyncpa [#allocation3 + $0x1], 1 }
 0x159   :  { %383 = vsyncpa [#allocation4], 1 }
 0x15a   :  { %385 = vsyncpa [#allocation4 + $0x1], 1 }

</bundles_post_ra>
